<compile_context>
chip_gen: v6e
topology: v6e:2x2x1
jax: 0.10.0
libtpu: 0.0.40
codegen_flags: <defaults>
</compile_context>

<pallas_src>
import jax
import jax.numpy as jnp
from jax.experimental import pallas as pl
from jax.experimental.pallas import tpu as pltpu

INPUT_SIZE = 2
HIDDEN_SIZE = 64
OUTPUT_SIZE = 1
NUM_LAYERS = 2
SEQ_LEN = 8
OUT_PAD = 128      # lane-dense padded output width (sliced back in wrapper)


def net_kernel(x_ref,
               wih0_ref, whh0_ref, b0_ref,    # RNN layer 0 (whh0 bf16, b0 = b_ih+b_hh)
               wih1_ref, whh1_ref, b1_ref,    # RNN layer 1 (both weights bf16)
               h0_ref,                        # initial hidden (num_layers, H)
               wf1_ref, bf1_ref,              # fc1
               wf2_ref, bf2_ref,              # fc2 (padded to OUT_PAD lanes)
               out_ref,                       # (seq, OUT_PAD)
               hout_ref,                      # (num_layers, H) final hidden
               rnn_ref):                      # VMEM scratch (seq, H) f32
    f32 = jnp.float32
    bf16 = jnp.bfloat16
    seq = x_ref.shape[0]

    # Layer-0 input projection for all timesteps at once (single matmul, off
    # the serial chain).  Bias already folded in.
    xw0 = jnp.dot(x_ref[...], wih0_ref[...],
                  preferred_element_type=f32) + b0_ref[...]

    whh0 = whh0_ref[...]          # (H, H) bf16
    wih1 = wih1_ref[...]          # (H, H) bf16
    whh1 = whh1_ref[...]          # (H, H) bf16
    b1 = b1_ref[...]              # (1, H) f32

    h0 = h0_ref[0:1, :]           # layer-0 hidden state, (1, H) f32
    h1 = h0_ref[1:2, :]           # layer-1 hidden state, (1, H) f32

    # Sequential recurrence; seq is a trace-time constant so this unrolls
    # statically (all slices are static).  Critical chain per step:
    #   matmul(h0@whh0) -> add -> tanh -> matmul(h0@wih1) -> add -> tanh.
    # The whh1 term + b1 depends only on h1(t-1) and overlaps the layer-0 work.
    for t in range(seq):
        h1w = jnp.dot(h1.astype(bf16), whh1,
                      preferred_element_type=f32) + b1                 # off-chain
        h0 = jnp.tanh(xw0[t:t + 1, :] +
                      jnp.dot(h0.astype(bf16), whh0,
                              preferred_element_type=f32))
        h1 = jnp.tanh(jnp.dot(h0.astype(bf16), wih1,
                              preferred_element_type=f32) + h1w)
        rnn_ref[t:t + 1, :] = h1                                       # row store

    rnn_out = rnn_ref[...]                                             # (seq, H)

    hidden = jnp.maximum(
        jnp.dot(rnn_out, wf1_ref[...], preferred_element_type=f32)
        + bf1_ref[...],
        0.0)                                                           # relu(fc1(out))
    # fc2 with lane-dense (H, OUT_PAD) weight -> unmasked full-width store.
    out_ref[...] = (jnp.dot(hidden, wf2_ref[...], preferred_element_type=f32)
                    + bf2_ref[...])

    # Emit the updated hidden state (PyTorch module mutates self.hidden).
    hout_ref[0:1, :] = h0
    hout_ref[1:2, :] = h1


def net_forward(x, p):
    seq = x.shape[0]
    args = (x,
            p["wih0_t"], p["whh0_bf"], p["b0"],
            p["wih1_bf"], p["whh1_bf"], p["b1"],
            p["h0"],
            p["wf1_t"], p["bf1"],
            p["wf2_pad"], p["bf2_pad"])
    vmem = pl.BlockSpec(memory_space=pltpu.MemorySpace.VMEM)
    out_full, h_new = pl.pallas_call(
        net_kernel,
        out_shape=(jax.ShapeDtypeStruct((seq, OUT_PAD), jnp.float32),
                   jax.ShapeDtypeStruct((NUM_LAYERS, HIDDEN_SIZE), jnp.float32)),
        in_specs=[vmem] * len(args),
        out_specs=(vmem, vmem),
        scratch_shapes=[pltpu.VMEM((seq, HIDDEN_SIZE), jnp.float32)],
    )(*args)
    return out_full[:, :OUTPUT_SIZE], h_new


def init_params(key, input_size=INPUT_SIZE, hidden_size=HIDDEN_SIZE,
                output_size=OUTPUT_SIZE):
    H, I, O = hidden_size, input_size, output_size
    ks = jax.random.split(key, 12)

    def u(k, shape, fan_in):
        bound = 1.0 / (fan_in ** 0.5)
        return jax.random.uniform(k, shape, jnp.float32, -bound, bound)

    # PyTorch nn.RNN stores W_ih (H, in), W_hh (H, H); we pass transposes.
    wih0 = u(ks[0], (H, I), H)
    whh0 = u(ks[1], (H, H), H)
    bih0 = u(ks[2], (H,), H)
    bhh0 = u(ks[3], (H,), H)
    wih1 = u(ks[4], (H, H), H)
    whh1 = u(ks[5], (H, H), H)
    bih1 = u(ks[6], (H,), H)
    bhh1 = u(ks[7], (H,), H)
    # fc1: Linear(H, H); fc2: Linear(H, O)
    wf1 = u(ks[8], (H, H), H)
    bf1 = u(ks[9], (H,), H)
    wf2 = u(ks[10], (O, H), H)
    bf2 = u(ks[11], (O,), H)

    # Lane-dense padded fc2.
    wf2_pad = jnp.zeros((H, OUT_PAD), jnp.float32).at[:, :O].set(wf2.T)
    bf2_pad = jnp.zeros((1, OUT_PAD), jnp.float32).at[:, :O].set(bf2)

    return {
        # kernel args
        "wih0_t": wih0.T,
        "whh0_bf": whh0.T.astype(jnp.bfloat16),
        "b0": (bih0 + bhh0).reshape(1, H),
        "wih1_bf": wih1.T.astype(jnp.bfloat16),
        "whh1_bf": whh1.T.astype(jnp.bfloat16),
        "b1": (bih1 + bhh1).reshape(1, H),
        "h0": jnp.zeros((NUM_LAYERS, H), jnp.float32),           # self.hidden buffer
        "wf1_t": wf1.T, "bf1": bf1.reshape(1, H),
        "wf2_pad": wf2_pad, "bf2_pad": bf2_pad,
        # f32 copies kept only for the pure-f32 reference check
        "whh0_t": whh0.T, "wih1_t": wih1.T, "whh1_t": whh1.T,
        "wf2_t": wf2.T, "bf2": bf2.reshape(1, O),
    }


def reference_forward_bf16(x, p):
    """Pure-JAX reference mirroring the kernel's numerics exactly."""
    bf16 = jnp.bfloat16
    f32 = jnp.float32
    xw0 = x @ p["wih0_t"] + p["b0"]
    h0 = p["h0"][0:1]
    h1 = p["h0"][1:2]
    outs = []
    for t in range(x.shape[0]):
        h1w = jnp.dot(h1.astype(bf16), p["whh1_bf"],
                      preferred_element_type=f32) + p["b1"]
        h0 = jnp.tanh(xw0[t:t + 1] +
                      jnp.dot(h0.astype(bf16), p["whh0_bf"],
                              preferred_element_type=f32))
        h1 = jnp.tanh(jnp.dot(h0.astype(bf16), p["wih1_bf"],
                              preferred_element_type=f32) + h1w)
        outs.append(h1)
    r = jnp.concatenate(outs, axis=0)
    hid = jnp.maximum(r @ p["wf1_t"] + p["bf1"], 0.0)
    out = (hid @ p["wf2_pad"] + p["bf2_pad"])[:, :OUTPUT_SIZE]
    h_final = jnp.concatenate([h0, h1], axis=0)
    return out, h_final


def reference_forward_f32(x, p):
    """Pure-f32 reference mirroring PyTorch semantics (loose check)."""
    h0 = p["h0"][0]
    h1 = p["h0"][1]
    outs = []
    for t in range(x.shape[0]):
        h0 = jnp.tanh(x[t] @ p["wih0_t"] + p["b0"][0] + h0 @ p["whh0_t"])
        h1 = jnp.tanh(h0 @ p["wih1_t"] + h1 @ p["whh1_t"] + p["b1"][0])
        outs.append(h1)
    r = jnp.stack(outs, axis=0)
    h = jnp.maximum(r @ p["wf1_t"] + p["bf1"][0], 0.0)
    out = h @ p["wf2_t"] + p["bf2"][0]
    h_final = jnp.stack([h0, h1], axis=0)
    return out, h_final


if __name__ == "__main__":
    key = jax.random.PRNGKey(0)
    k_x, k_p = jax.random.split(key)
    x = jax.random.normal(k_x, (SEQ_LEN, INPUT_SIZE), jnp.float32)
    params = init_params(k_p)

    out, h_new = net_forward(x, params)
    out = jax.block_until_ready(out)
    h_new = jax.block_until_ready(h_new)
    assert out.shape == (SEQ_LEN, OUTPUT_SIZE)
    assert h_new.shape == (NUM_LAYERS, HIDDEN_SIZE)

    # Tight check against a reference that mirrors the kernel's bf16 math.
    ref_out_bf, ref_h_bf = reference_forward_bf16(x, params)
    assert jnp.allclose(out, ref_out_bf, atol=1e-3, rtol=1e-3), "out mismatch vs bf16 reference"
    assert jnp.allclose(h_new, ref_h_bf, atol=1e-3, rtol=1e-3), "hidden mismatch vs bf16 reference"

    # Loose check against the pure-f32 PyTorch-semantics reference.
    ref_out_f32, ref_h_f32 = reference_forward_f32(x, params)
    assert jnp.allclose(out, ref_out_f32, atol=5e-2, rtol=5e-2), "out mismatch vs f32 reference"
    assert jnp.allclose(h_new, ref_h_f32, atol=5e-2, rtol=5e-2), "hidden mismatch vs f32 reference"

    print("KERNEL_OK")
</pallas_src>

<mosaic_0001>
module attributes {stable_mosaic.version = 11 : i64} {
  func.func @net_kernel(%arg0: memref<8x2xf32, #tpu.memory_space<vmem>>, %arg1: memref<2x64xf32, #tpu.memory_space<vmem>>, %arg2: memref<64x64xbf16, #tpu.memory_space<vmem>>, %arg3: memref<1x64xf32, #tpu.memory_space<vmem>>, %arg4: memref<64x64xbf16, #tpu.memory_space<vmem>>, %arg5: memref<64x64xbf16, #tpu.memory_space<vmem>>, %arg6: memref<1x64xf32, #tpu.memory_space<vmem>>, %arg7: memref<2x64xf32, #tpu.memory_space<vmem>>, %arg8: memref<64x64xf32, #tpu.memory_space<vmem>>, %arg9: memref<1x64xf32, #tpu.memory_space<vmem>>, %arg10: memref<64x128xf32, #tpu.memory_space<vmem>>, %arg11: memref<1x128xf32, #tpu.memory_space<vmem>>, %arg12: memref<8x128xf32, #tpu.memory_space<vmem>>, %arg13: memref<2x64xf32, #tpu.memory_space<vmem>>, %arg14: memref<8x64xf32, #tpu.memory_space<vmem>>) attributes {dimension_semantics = [], scalar_prefetch = 0 : i64, scratch_operands = 1 : i64, tpu.core_type = #tpu.core_type<tc>} {
    %c0 = arith.constant 0 : index
    %c0_0 = arith.constant 0 : index
    %0 = vector.load %arg0[%c0, %c0_0] : memref<8x2xf32, #tpu.memory_space<vmem>>, vector<8x2xf32>
    %c0_1 = arith.constant 0 : index
    %c0_2 = arith.constant 0 : index
    %1 = vector.load %arg1[%c0_1, %c0_2] : memref<2x64xf32, #tpu.memory_space<vmem>>, vector<2x64xf32>
    %cst = arith.constant dense<0.000000e+00> : vector<8x64xf32>
    %2 = tpu.matmul %0, %1, %cst {dimension_numbers = #tpu.dot_dimension_numbers<[1], [0], [0], [1], [0, 0, 1, 1], [], []>} : vector<8x2xf32>, vector<2x64xf32>, vector<8x64xf32> -> vector<8x64xf32>
    %c0_3 = arith.constant 0 : index
    %c0_4 = arith.constant 0 : index
    %3 = vector.load %arg3[%c0_3, %c0_4] : memref<1x64xf32, #tpu.memory_space<vmem>>, vector<1x64xf32>
    %4 = vector.broadcast %3 : vector<1x64xf32> to vector<8x64xf32>
    %5 = arith.addf %2, %4 : vector<8x64xf32>
    %c0_5 = arith.constant 0 : index
    %c0_6 = arith.constant 0 : index
    %6 = vector.load %arg2[%c0_5, %c0_6] : memref<64x64xbf16, #tpu.memory_space<vmem>>, vector<64x64xbf16>
    %c0_7 = arith.constant 0 : index
    %c0_8 = arith.constant 0 : index
    %7 = vector.load %arg4[%c0_7, %c0_8] : memref<64x64xbf16, #tpu.memory_space<vmem>>, vector<64x64xbf16>
    %c0_9 = arith.constant 0 : index
    %c0_10 = arith.constant 0 : index
    %8 = vector.load %arg5[%c0_9, %c0_10] : memref<64x64xbf16, #tpu.memory_space<vmem>>, vector<64x64xbf16>
    %c0_11 = arith.constant 0 : index
    %c0_12 = arith.constant 0 : index
    %9 = vector.load %arg6[%c0_11, %c0_12] : memref<1x64xf32, #tpu.memory_space<vmem>>, vector<1x64xf32>
    %c0_13 = arith.constant 0 : index
    %c0_14 = arith.constant 0 : index
    %10 = vector.load %arg7[%c0_13, %c0_14] : memref<2x64xf32, #tpu.memory_space<vmem>>, vector<1x64xf32>
    %c1 = arith.constant 1 : index
    %c0_15 = arith.constant 0 : index
    %11 = vector.load %arg7[%c1, %c0_15] : memref<2x64xf32, #tpu.memory_space<vmem>>, vector<1x64xf32>
    %12 = arith.truncf %11 : vector<1x64xf32> to vector<1x64xbf16>
    %cst_16 = arith.constant dense<0.000000e+00> : vector<1x64xf32>
    %13 = tpu.matmul %12, %8, %cst_16 {dimension_numbers = #tpu.dot_dimension_numbers<[1], [0], [0], [1], [0, 0, 1, 1], [], []>} : vector<1x64xbf16>, vector<64x64xbf16>, vector<1x64xf32> -> vector<1x64xf32>
    %14 = arith.addf %13, %9 : vector<1x64xf32>
    %15 = vector.extract_strided_slice %5 {offsets = [0, 0], sizes = [1, 64], strides = [1, 1]} : vector<8x64xf32> to vector<1x64xf32>
    %16 = arith.truncf %10 : vector<1x64xf32> to vector<1x64xbf16>
    %cst_17 = arith.constant dense<0.000000e+00> : vector<1x64xf32>
    %17 = tpu.matmul %16, %6, %cst_17 {dimension_numbers = #tpu.dot_dimension_numbers<[1], [0], [0], [1], [0, 0, 1, 1], [], []>} : vector<1x64xbf16>, vector<64x64xbf16>, vector<1x64xf32> -> vector<1x64xf32>
    %18 = arith.addf %15, %17 : vector<1x64xf32>
    %19 = math.tanh %18 : vector<1x64xf32>
    %20 = arith.truncf %19 : vector<1x64xf32> to vector<1x64xbf16>
    %cst_18 = arith.constant dense<0.000000e+00> : vector<1x64xf32>
    %21 = tpu.matmul %20, %7, %cst_18 {dimension_numbers = #tpu.dot_dimension_numbers<[1], [0], [0], [1], [0, 0, 1, 1], [], []>} : vector<1x64xbf16>, vector<64x64xbf16>, vector<1x64xf32> -> vector<1x64xf32>
    %22 = arith.addf %21, %14 : vector<1x64xf32>
    %23 = math.tanh %22 : vector<1x64xf32>
    %c0_19 = arith.constant 0 : index
    %c0_20 = arith.constant 0 : index
    %24 = vector.load %arg14[%c0_19, %c0_20] : memref<8x64xf32, #tpu.memory_space<vmem>>, vector<1x64xf32>
    tpu.vector_store %arg14[%c0_19, %c0_20], %23 {strides = array<i32>} : memref<8x64xf32, #tpu.memory_space<vmem>>, vector<1x64xf32>,
    %25 = arith.truncf %23 : vector<1x64xf32> to vector<1x64xbf16>
    %cst_21 = arith.constant dense<0.000000e+00> : vector<1x64xf32>
    %26 = tpu.matmul %25, %8, %cst_21 {dimension_numbers = #tpu.dot_dimension_numbers<[1], [0], [0], [1], [0, 0, 1, 1], [], []>} : vector<1x64xbf16>, vector<64x64xbf16>, vector<1x64xf32> -> vector<1x64xf32>
    %27 = arith.addf %26, %9 : vector<1x64xf32>
    %28 = vector.extract_strided_slice %5 {offsets = [1, 0], sizes = [1, 64], strides = [1, 1]} : vector<8x64xf32> to vector<1x64xf32>
    %29 = arith.truncf %19 : vector<1x64xf32> to vector<1x64xbf16>
    %cst_22 = arith.constant dense<0.000000e+00> : vector<1x64xf32>
    %30 = tpu.matmul %29, %6, %cst_22 {dimension_numbers = #tpu.dot_dimension_numbers<[1], [0], [0], [1], [0, 0, 1, 1], [], []>} : vector<1x64xbf16>, vector<64x64xbf16>, vector<1x64xf32> -> vector<1x64xf32>
    %31 = arith.addf %28, %30 : vector<1x64xf32>
    %32 = math.tanh %31 : vector<1x64xf32>
    %33 = arith.truncf %32 : vector<1x64xf32> to vector<1x64xbf16>
    %cst_23 = arith.constant dense<0.000000e+00> : vector<1x64xf32>
    %34 = tpu.matmul %33, %7, %cst_23 {dimension_numbers = #tpu.dot_dimension_numbers<[1], [0], [0], [1], [0, 0, 1, 1], [], []>} : vector<1x64xbf16>, vector<64x64xbf16>, vector<1x64xf32> -> vector<1x64xf32>
    %35 = arith.addf %34, %27 : vector<1x64xf32>
    %36 = math.tanh %35 : vector<1x64xf32>
    %c1_24 = arith.constant 1 : index
    %c0_25 = arith.constant 0 : index
    %37 = vector.load %arg14[%c1_24, %c0_25] : memref<8x64xf32, #tpu.memory_space<vmem>>, vector<1x64xf32>
    tpu.vector_store %arg14[%c1_24, %c0_25], %36 {strides = array<i32>} : memref<8x64xf32, #tpu.memory_space<vmem>>, vector<1x64xf32>,
    %38 = arith.truncf %36 : vector<1x64xf32> to vector<1x64xbf16>
    %cst_26 = arith.constant dense<0.000000e+00> : vector<1x64xf32>
    %39 = tpu.matmul %38, %8, %cst_26 {dimension_numbers = #tpu.dot_dimension_numbers<[1], [0], [0], [1], [0, 0, 1, 1], [], []>} : vector<1x64xbf16>, vector<64x64xbf16>, vector<1x64xf32> -> vector<1x64xf32>
    %40 = arith.addf %39, %9 : vector<1x64xf32>
    %41 = vector.extract_strided_slice %5 {offsets = [2, 0], sizes = [1, 64], strides = [1, 1]} : vector<8x64xf32> to vector<1x64xf32>
    %42 = arith.truncf %32 : vector<1x64xf32> to vector<1x64xbf16>
    %cst_27 = arith.constant dense<0.000000e+00> : vector<1x64xf32>
    %43 = tpu.matmul %42, %6, %cst_27 {dimension_numbers = #tpu.dot_dimension_numbers<[1], [0], [0], [1], [0, 0, 1, 1], [], []>} : vector<1x64xbf16>, vector<64x64xbf16>, vector<1x64xf32> -> vector<1x64xf32>
    %44 = arith.addf %41, %43 : vector<1x64xf32>
    %45 = math.tanh %44 : vector<1x64xf32>
    %46 = arith.truncf %45 : vector<1x64xf32> to vector<1x64xbf16>
    %cst_28 = arith.constant dense<0.000000e+00> : vector<1x64xf32>
    %47 = tpu.matmul %46, %7, %cst_28 {dimension_numbers = #tpu.dot_dimension_numbers<[1], [0], [0], [1], [0, 0, 1, 1], [], []>} : vector<1x64xbf16>, vector<64x64xbf16>, vector<1x64xf32> -> vector<1x64xf32>
    %48 = arith.addf %47, %40 : vector<1x64xf32>
    %49 = math.tanh %48 : vector<1x64xf32>
    %c2 = arith.constant 2 : index
    %c0_29 = arith.constant 0 : index
    %50 = vector.load %arg14[%c2, %c0_29] : memref<8x64xf32, #tpu.memory_space<vmem>>, vector<1x64xf32>
    tpu.vector_store %arg14[%c2, %c0_29], %49 {strides = array<i32>} : memref<8x64xf32, #tpu.memory_space<vmem>>, vector<1x64xf32>,
    %51 = arith.truncf %49 : vector<1x64xf32> to vector<1x64xbf16>
    %cst_30 = arith.constant dense<0.000000e+00> : vector<1x64xf32>
    %52 = tpu.matmul %51, %8, %cst_30 {dimension_numbers = #tpu.dot_dimension_numbers<[1], [0], [0], [1], [0, 0, 1, 1], [], []>} : vector<1x64xbf16>, vector<64x64xbf16>, vector<1x64xf32> -> vector<1x64xf32>
    %53 = arith.addf %52, %9 : vector<1x64xf32>
    %54 = vector.extract_strided_slice %5 {offsets = [3, 0], sizes = [1, 64], strides = [1, 1]} : vector<8x64xf32> to vector<1x64xf32>
    %55 = arith.truncf %45 : vector<1x64xf32> to vector<1x64xbf16>
    %cst_31 = arith.constant dense<0.000000e+00> : vector<1x64xf32>
    %56 = tpu.matmul %55, %6, %cst_31 {dimension_numbers = #tpu.dot_dimension_numbers<[1], [0], [0], [1], [0, 0, 1, 1], [], []>} : vector<1x64xbf16>, vector<64x64xbf16>, vector<1x64xf32> -> vector<1x64xf32>
    %57 = arith.addf %54, %56 : vector<1x64xf32>
    %58 = math.tanh %57 : vector<1x64xf32>
    %59 = arith.truncf %58 : vector<1x64xf32> to vector<1x64xbf16>
    %cst_32 = arith.constant dense<0.000000e+00> : vector<1x64xf32>
    %60 = tpu.matmul %59, %7, %cst_32 {dimension_numbers = #tpu.dot_dimension_numbers<[1], [0], [0], [1], [0, 0, 1, 1], [], []>} : vector<1x64xbf16>, vector<64x64xbf16>, vector<1x64xf32> -> vector<1x64xf32>
    %61 = arith.addf %60, %53 : vector<1x64xf32>
    %62 = math.tanh %61 : vector<1x64xf32>
    %c3 = arith.constant 3 : index
    %c0_33 = arith.constant 0 : index
    %63 = vector.load %arg14[%c3, %c0_33] : memref<8x64xf32, #tpu.memory_space<vmem>>, vector<1x64xf32>
    tpu.vector_store %arg14[%c3, %c0_33], %62 {strides = array<i32>} : memref<8x64xf32, #tpu.memory_space<vmem>>, vector<1x64xf32>,
    %64 = arith.truncf %62 : vector<1x64xf32> to vector<1x64xbf16>
    %cst_34 = arith.constant dense<0.000000e+00> : vector<1x64xf32>
    %65 = tpu.matmul %64, %8, %cst_34 {dimension_numbers = #tpu.dot_dimension_numbers<[1], [0], [0], [1], [0, 0, 1, 1], [], []>} : vector<1x64xbf16>, vector<64x64xbf16>, vector<1x64xf32> -> vector<1x64xf32>
    %66 = arith.addf %65, %9 : vector<1x64xf32>
    %67 = vector.extract_strided_slice %5 {offsets = [4, 0], sizes = [1, 64], strides = [1, 1]} : vector<8x64xf32> to vector<1x64xf32>
    %68 = arith.truncf %58 : vector<1x64xf32> to vector<1x64xbf16>
    %cst_35 = arith.constant dense<0.000000e+00> : vector<1x64xf32>
    %69 = tpu.matmul %68, %6, %cst_35 {dimension_numbers = #tpu.dot_dimension_numbers<[1], [0], [0], [1], [0, 0, 1, 1], [], []>} : vector<1x64xbf16>, vector<64x64xbf16>, vector<1x64xf32> -> vector<1x64xf32>
    %70 = arith.addf %67, %69 : vector<1x64xf32>
    %71 = math.tanh %70 : vector<1x64xf32>
    %72 = arith.truncf %71 : vector<1x64xf32> to vector<1x64xbf16>
    %cst_36 = arith.constant dense<0.000000e+00> : vector<1x64xf32>
    %73 = tpu.matmul %72, %7, %cst_36 {dimension_numbers = #tpu.dot_dimension_numbers<[1], [0], [0], [1], [0, 0, 1, 1], [], []>} : vector<1x64xbf16>, vector<64x64xbf16>, vector<1x64xf32> -> vector<1x64xf32>
    %74 = arith.addf %73, %66 : vector<1x64xf32>
    %75 = math.tanh %74 : vector<1x64xf32>
    %c4 = arith.constant 4 : index
    %c0_37 = arith.constant 0 : index
    %76 = vector.load %arg14[%c4, %c0_37] : memref<8x64xf32, #tpu.memory_space<vmem>>, vector<1x64xf32>
    tpu.vector_store %arg14[%c4, %c0_37], %75 {strides = array<i32>} : memref<8x64xf32, #tpu.memory_space<vmem>>, vector<1x64xf32>,
    %77 = arith.truncf %75 : vector<1x64xf32> to vector<1x64xbf16>
    %cst_38 = arith.constant dense<0.000000e+00> : vector<1x64xf32>
    %78 = tpu.matmul %77, %8, %cst_38 {dimension_numbers = #tpu.dot_dimension_numbers<[1], [0], [0], [1], [0, 0, 1, 1], [], []>} : vector<1x64xbf16>, vector<64x64xbf16>, vector<1x64xf32> -> vector<1x64xf32>
    %79 = arith.addf %78, %9 : vector<1x64xf32>
    %80 = vector.extract_strided_slice %5 {offsets = [5, 0], sizes = [1, 64], strides = [1, 1]} : vector<8x64xf32> to vector<1x64xf32>
    %81 = arith.truncf %71 : vector<1x64xf32> to vector<1x64xbf16>
    %cst_39 = arith.constant dense<0.000000e+00> : vector<1x64xf32>
    %82 = tpu.matmul %81, %6, %cst_39 {dimension_numbers = #tpu.dot_dimension_numbers<[1], [0], [0], [1], [0, 0, 1, 1], [], []>} : vector<1x64xbf16>, vector<64x64xbf16>, vector<1x64xf32> -> vector<1x64xf32>
    %83 = arith.addf %80, %82 : vector<1x64xf32>
    %84 = math.tanh %83 : vector<1x64xf32>
    %85 = arith.truncf %84 : vector<1x64xf32> to vector<1x64xbf16>
    %cst_40 = arith.constant dense<0.000000e+00> : vector<1x64xf32>
    %86 = tpu.matmul %85, %7, %cst_40 {dimension_numbers = #tpu.dot_dimension_numbers<[1], [0], [0], [1], [0, 0, 1, 1], [], []>} : vector<1x64xbf16>, vector<64x64xbf16>, vector<1x64xf32> -> vector<1x64xf32>
    %87 = arith.addf %86, %79 : vector<1x64xf32>
    %88 = math.tanh %87 : vector<1x64xf32>
    %c5 = arith.constant 5 : index
    %c0_41 = arith.constant 0 : index
    %89 = vector.load %arg14[%c5, %c0_41] : memref<8x64xf32, #tpu.memory_space<vmem>>, vector<1x64xf32>
    tpu.vector_store %arg14[%c5, %c0_41], %88 {strides = array<i32>} : memref<8x64xf32, #tpu.memory_space<vmem>>, vector<1x64xf32>,
    %90 = arith.truncf %88 : vector<1x64xf32> to vector<1x64xbf16>
    %cst_42 = arith.constant dense<0.000000e+00> : vector<1x64xf32>
    %91 = tpu.matmul %90, %8, %cst_42 {dimension_numbers = #tpu.dot_dimension_numbers<[1], [0], [0], [1], [0, 0, 1, 1], [], []>} : vector<1x64xbf16>, vector<64x64xbf16>, vector<1x64xf32> -> vector<1x64xf32>
    %92 = arith.addf %91, %9 : vector<1x64xf32>
    %93 = vector.extract_strided_slice %5 {offsets = [6, 0], sizes = [1, 64], strides = [1, 1]} : vector<8x64xf32> to vector<1x64xf32>
    %94 = arith.truncf %84 : vector<1x64xf32> to vector<1x64xbf16>
    %cst_43 = arith.constant dense<0.000000e+00> : vector<1x64xf32>
    %95 = tpu.matmul %94, %6, %cst_43 {dimension_numbers = #tpu.dot_dimension_numbers<[1], [0], [0], [1], [0, 0, 1, 1], [], []>} : vector<1x64xbf16>, vector<64x64xbf16>, vector<1x64xf32> -> vector<1x64xf32>
    %96 = arith.addf %93, %95 : vector<1x64xf32>
    %97 = math.tanh %96 : vector<1x64xf32>
    %98 = arith.truncf %97 : vector<1x64xf32> to vector<1x64xbf16>
    %cst_44 = arith.constant dense<0.000000e+00> : vector<1x64xf32>
    %99 = tpu.matmul %98, %7, %cst_44 {dimension_numbers = #tpu.dot_dimension_numbers<[1], [0], [0], [1], [0, 0, 1, 1], [], []>} : vector<1x64xbf16>, vector<64x64xbf16>, vector<1x64xf32> -> vector<1x64xf32>
    %100 = arith.addf %99, %92 : vector<1x64xf32>
    %101 = math.tanh %100 : vector<1x64xf32>
    %c6 = arith.constant 6 : index
    %c0_45 = arith.constant 0 : index
    %102 = vector.load %arg14[%c6, %c0_45] : memref<8x64xf32, #tpu.memory_space<vmem>>, vector<1x64xf32>
    tpu.vector_store %arg14[%c6, %c0_45], %101 {strides = array<i32>} : memref<8x64xf32, #tpu.memory_space<vmem>>, vector<1x64xf32>,
    %103 = arith.truncf %101 : vector<1x64xf32> to vector<1x64xbf16>
    %cst_46 = arith.constant dense<0.000000e+00> : vector<1x64xf32>
    %104 = tpu.matmul %103, %8, %cst_46 {dimension_numbers = #tpu.dot_dimension_numbers<[1], [0], [0], [1], [0, 0, 1, 1], [], []>} : vector<1x64xbf16>, vector<64x64xbf16>, vector<1x64xf32> -> vector<1x64xf32>
    %105 = arith.addf %104, %9 : vector<1x64xf32>
    %106 = vector.extract_strided_slice %5 {offsets = [7, 0], sizes = [1, 64], strides = [1, 1]} : vector<8x64xf32> to vector<1x64xf32>
    %107 = arith.truncf %97 : vector<1x64xf32> to vector<1x64xbf16>
    %cst_47 = arith.constant dense<0.000000e+00> : vector<1x64xf32>
    %108 = tpu.matmul %107, %6, %cst_47 {dimension_numbers = #tpu.dot_dimension_numbers<[1], [0], [0], [1], [0, 0, 1, 1], [], []>} : vector<1x64xbf16>, vector<64x64xbf16>, vector<1x64xf32> -> vector<1x64xf32>
    %109 = arith.addf %106, %108 : vector<1x64xf32>
    %110 = math.tanh %109 : vector<1x64xf32>
    %111 = arith.truncf %110 : vector<1x64xf32> to vector<1x64xbf16>
    %cst_48 = arith.constant dense<0.000000e+00> : vector<1x64xf32>
    %112 = tpu.matmul %111, %7, %cst_48 {dimension_numbers = #tpu.dot_dimension_numbers<[1], [0], [0], [1], [0, 0, 1, 1], [], []>} : vector<1x64xbf16>, vector<64x64xbf16>, vector<1x64xf32> -> vector<1x64xf32>
    %113 = arith.addf %112, %105 : vector<1x64xf32>
    %114 = math.tanh %113 : vector<1x64xf32>
    %c7 = arith.constant 7 : index
    %c0_49 = arith.constant 0 : index
    %115 = vector.load %arg14[%c7, %c0_49] : memref<8x64xf32, #tpu.memory_space<vmem>>, vector<1x64xf32>
    tpu.vector_store %arg14[%c7, %c0_49], %114 {strides = array<i32>} : memref<8x64xf32, #tpu.memory_space<vmem>>, vector<1x64xf32>,
    %c0_50 = arith.constant 0 : index
    %c0_51 = arith.constant 0 : index
    %116 = vector.load %arg14[%c0_50, %c0_51] : memref<8x64xf32, #tpu.memory_space<vmem>>, vector<8x64xf32>
    %c0_52 = arith.constant 0 : index
    %c0_53 = arith.constant 0 : index
    %117 = vector.load %arg8[%c0_52, %c0_53] : memref<64x64xf32, #tpu.memory_space<vmem>>, vector<64x64xf32>
    %cst_54 = arith.constant dense<0.000000e+00> : vector<8x64xf32>
    %118 = tpu.matmul %116, %117, %cst_54 {dimension_numbers = #tpu.dot_dimension_numbers<[1], [0], [0], [1], [0, 0, 1, 1], [], []>} : vector<8x64xf32>, vector<64x64xf32>, vector<8x64xf32> -> vector<8x64xf32>
    %c0_55 = arith.constant 0 : index
    %c0_56 = arith.constant 0 : index
    %119 = vector.load %arg9[%c0_55, %c0_56] : memref<1x64xf32, #tpu.memory_space<vmem>>, vector<1x64xf32>
    %120 = vector.broadcast %119 : vector<1x64xf32> to vector<8x64xf32>
    %121 = arith.addf %118, %120 : vector<8x64xf32>
    %cst_57 = arith.constant 0.000000e+00 : f32
    %122 = vector.broadcast %cst_57 : f32 to vector<8x64xf32>
    %123 = arith.maximumf %121, %122 : vector<8x64xf32>
    %c0_58 = arith.constant 0 : index
    %c0_59 = arith.constant 0 : index
    %124 = vector.load %arg10[%c0_58, %c0_59] : memref<64x128xf32, #tpu.memory_space<vmem>>, vector<64x128xf32>
    %cst_60 = arith.constant dense<0.000000e+00> : vector<8x128xf32>
    %125 = tpu.matmul %123, %124, %cst_60 {dimension_numbers = #tpu.dot_dimension_numbers<[1], [0], [0], [1], [0, 0, 1, 1], [], []>} : vector<8x64xf32>, vector<64x128xf32>, vector<8x128xf32> -> vector<8x128xf32>
    %c0_61 = arith.constant 0 : index
    %c0_62 = arith.constant 0 : index
    %126 = vector.load %arg11[%c0_61, %c0_62] : memref<1x128xf32, #tpu.memory_space<vmem>>, vector<1x128xf32>
    %127 = vector.broadcast %126 : vector<1x128xf32> to vector<8x128xf32>
    %128 = arith.addf %125, %127 : vector<8x128xf32>
    %c0_63 = arith.constant 0 : index
    %c0_64 = arith.constant 0 : index
    %129 = vector.load %arg12[%c0_63, %c0_64] : memref<8x128xf32, #tpu.memory_space<vmem>>, vector<8x128xf32>
    tpu.vector_store %arg12[%c0_63, %c0_64], %128 {strides = array<i32>} : memref<8x128xf32, #tpu.memory_space<vmem>>, vector<8x128xf32>,
    %c0_65 = arith.constant 0 : index
    %c0_66 = arith.constant 0 : index
    %130 = vector.load %arg13[%c0_65, %c0_66] : memref<2x64xf32, #tpu.memory_space<vmem>>, vector<1x64xf32>
    tpu.vector_store %arg13[%c0_65, %c0_66], %110 {strides = array<i32>} : memref<2x64xf32, #tpu.memory_space<vmem>>, vector<1x64xf32>,
    %c1_67 = arith.constant 1 : index
    %c0_68 = arith.constant 0 : index
    %131 = vector.load %arg13[%c1_67, %c0_68] : memref<2x64xf32, #tpu.memory_space<vmem>>, vector<1x64xf32>
    tpu.vector_store %arg13[%c1_67, %c0_68], %114 {strides = array<i32>} : memref<2x64xf32, #tpu.memory_space<vmem>>, vector<1x64xf32>,
    return
  }
}

</mosaic_0001>

<bundles_post_ra>
// kernel: tpu_custom_call.1
= control target key start
LH: loop header
LB: loop body
LE: loop exit
PB: predicated region body
PF: predicated region fallthrough
CT: control target
= control target key end

     0   :  { %19 = vsyncpa [#allocation4], 0  ;;  %s2823_s0 = inlined_call_operand.vmem [shape: f32[8,2], index: 0, kind: input, shape index: {}]   ;;  %s2824_s1 = inlined_call_operand.vmem [shape: f32[2,64], index: 1, kind: input, shape index: {}]   ;;  %s2825_s2 = inlined_call_operand.hbm [shape: bf16[64,64], index: 2, kind: input, shape index: {}]   ;;  %s2826_s3 = inlined_call_operand.vmem [shape: f32[1,64], index: 3, kind: input, shape index: {}]   ;;  %s2827_s4 = inlined_call_operand.hbm [shape: bf16[64,64], index: 4, kind: input, shape index: {}]   ;;  %s2828_s5 = inlined_call_operand.hbm [shape: bf16[64,64], index: 5, kind: input, shape index: {}]   ;;  %s2829_s6 = inlined_call_operand.vmem [shape: f32[1,64], index: 6, kind: input, shape index: {}]   ;;  %s2830_s7 = inlined_call_operand.vmem [shape: f32[2,64], index: 7, kind: input, shape index: {}]   ;;  %s2831_s8 = inlined_call_operand.hbm [shape: f32[64,64], index: 8, kind: input, shape index: {}]   ;;  %s2832_s9 = inlined_call_operand.vmem [shape: f32[1,64], index: 9, kind: input, shape index: {}]   ;;  %s2833_s10 = inlined_call_operand.hbm [shape: f32[64,128], index: 10, kind: input, shape index: {}]   ;;  %s2834_s11 = inlined_call_operand.vmem [shape: f32[1,128], index: 11, kind: input, shape index: {}]   ;;  %s2835_s12 = inlined_call_operand.hbm [shape: f32[8,128], index: 12, kind: output, shape index: {0}]   ;;  %s2836_s13 = inlined_call_operand.hbm [shape: f32[2,64], index: 13, kind: output, shape index: {1}]  }
   0x1   :  { %20 = vsyncpa [#allocation7], 0 }
   0x2   :  { %21 = vsyncpa [#allocation10], 0 }
   0x3   :  { %22 = vsyncpa [#allocation5], 0 }
   0x4   :  { %23 = vsyncpa [#allocation14], 0  ;;  %s2338_s25 = smov [#allocation6]   ;;  %s2339_s27 = smov [#allocation9]  }
   0x5   :  { %s47_s26 = sshll.u32 %s2338_s25, 4  ;;  %s75_s28 = sshll.u32 %s2339_s27, 4  ;;  %s48_s26 = int_to_ptr.vmem [resolvable:$true] %s47_s26  ;;  %s76_s28 = int_to_ptr.vmem [resolvable:$true] %s75_s28 }
   0x6   :  { %s2196_s29 = scalar_lea.vmem %s48_s26, 512  ;;  %p2201_p1 = scmp.lt.s32.totalorder %s48_s26, %s48_s26 }
   0x7   :  { %p2197_p0 = scmp.ne.s32.totalorder %s48_s26, %s2196_s29  ;;  %p2202_p2 = scmp.lt.s32.totalorder %s2196_s29, %s2196_s29 }
   0x9   :  { %p2203_p3 = por %p2202_p2, %p2201_p1 }
   0xb   :  { %p2204_p4 = pnand %p2203_p3, %p2197_p0 }
   0xd   :  { %2207 = shalt.err (!%p2204_p4)
}
   0xe   :  { %s2340_s30 = smov 64   ;;  %s2341_s14 = smov 4  }
   0xf   :  { %53 = dma.hbm_to_vmem [thread:$0]  %s2827_s4, 512, %s48_s26, [#allocation7], %s2340_s30, %s2340_s30, %s2341_s14  }
  0x10   :  { %s2216_s17 = scalar_lea.vmem %s76_s28, 1024  ;;  %p2221_p6 = scmp.lt.s32.totalorder %s76_s28, %s76_s28 }
  0x11   :  { %p2217_p5 = scmp.ne.s32.totalorder %s76_s28, %s2216_s17  ;;  %p2222_p7 = scmp.lt.s32.totalorder %s2216_s17, %s2216_s17 }
  0x13   :  { %p2223_p8 = por %p2222_p7, %p2221_p6 }
  0x15   :  { %p2224_p9 = pnand %p2223_p8, %p2217_p5 }
  0x17   :  { %2227 = shalt.err (!%p2224_p9)
}
  0x18   :  { %s2342_s18 = smov 128   ;;  %s2343_s19 = smov 8  }
  0x19   :  { %81 = dma.hbm_to_vmem [thread:$0]  %s2831_s8, 1024, %s76_s28, [#allocation10], %s2342_s18, %s2342_s18, %s2343_s19  }
  0x1a   :  { %s2344_s22 = smov [#allocation3]   ;;  %s2345_s24 = smov [#allocation8]  }
  0x1b   :  { %s33_s23 = sshll.u32 %s2344_s22, 4  ;;  %s59_s4 = sshll.u32 %s2345_s24, 4  ;;  %s34_s23 = int_to_ptr.vmem [resolvable:$true] %s33_s23  ;;  %s60_s4 = int_to_ptr.vmem [resolvable:$true] %s59_s4 }
  0x1c   :  { %s2236_s25 = scalar_lea.vmem %s34_s23, 512  ;;  %p2241_p11 = scmp.lt.s32.totalorder %s34_s23, %s34_s23 }
  0x1d   :  { %p2237_p10 = scmp.ne.s32.totalorder %s34_s23, %s2236_s25  ;;  %p2242_p12 = scmp.lt.s32.totalorder %s2236_s25, %s2236_s25 }
  0x1f   :  { %p2243_p13 = por %p2242_p12, %p2241_p11 }
  0x21   :  { %p2244_p0 = pnand %p2243_p13, %p2237_p10 }
  0x23   :  { %2247 = shalt.err (!%p2244_p0)
}
  0x24   :  { %39 = dma.hbm_to_vmem [thread:$0]  %s2825_s2, 512, %s34_s23, [#allocation4], %s2340_s30, %s2340_s30, %s2341_s14  }
  0x25   :  { %s2256_s8 = scalar_lea.vmem %s60_s4, 512  ;;  %p2261_p2 = scmp.lt.s32.totalorder %s60_s4, %s60_s4 }
  0x26   :  { %p2257_p1 = scmp.ne.s32.totalorder %s60_s4, %s2256_s8  ;;  %p2262_p3 = scmp.lt.s32.totalorder %s2256_s8, %s2256_s8 }
  0x28   :  { %p2263_p4 = por %p2262_p3, %p2261_p2 }
  0x2a   :  { %p2264_p5 = pnand %p2263_p4, %p2257_p1 }
  0x2c   :  { %2267 = shalt.err (!%p2264_p5)
}
  0x2d   :  { %65 = dma.hbm_to_vmem [thread:$0]  %s2828_s5, 512, %s60_s4, [#allocation7], %s2340_s30, %s2340_s30, %s2341_s14  }
  0x2e   :  { %s2346_s15 = smov [#allocation11]  }
  0x2f   :  { %s89_s16 = sshll.u32 %s2346_s15, 4  ;;  %s90_s16 = int_to_ptr.vmem [resolvable:$true] %s89_s16 }
  0x30   :  { %s2276_s17 = scalar_lea.vmem %s90_s16, 1024  ;;  %p2281_p7 = scmp.lt.s32.totalorder %s90_s16, %s90_s16 }
  0x31   :  { %p2277_p6 = scmp.ne.s32.totalorder %s90_s16, %s2276_s17  ;;  %p2282_p8 = scmp.lt.s32.totalorder %s2276_s17, %s2276_s17 }
  0x33   :  { %p2283_p9 = por %p2282_p8, %p2281_p7 }
  0x35   :  { %p2284_p10 = pnand %p2283_p9, %p2277_p6 }
  0x37   :  { %2287 = shalt.err (!%p2284_p10)
}
  0x38   :  { %95 = dma.hbm_to_vmem [thread:$0]  %s2833_s10, 1024, %s90_s16, [#allocation10], %s2342_s18, %s2342_s18, %s2343_s19  }
  0x39   :  { %2328 = dma.done.wait [#allocation4], 512  }
  0x3a   :  { %2329 = vsyncadd [#allocation4], 4294966784 }
  0x3b   :  { %2330 = dma.done.wait [#allocation7], 1024  }
  0x3c   :  { %2331 = vsyncadd [#allocation7], 4294966272 }
  0x3d   :  { %2332 = dma.done.wait [#allocation10], 2048  }
  0x3e   :  { %2333 = vsyncadd [#allocation10], 4294965248  ;;  %v2347_v0 = vmov 0.0   ;;  %vm2348_vm0 = vmmov 0   ;;  %vm127_vm1 = vcmask 1041408   ;;  %vm123_vm2 = vcmask 15360  }
  0x3f   :  { %1800 = vmatprep.subr.mxu0 %v2347_v0  ;;  %1802 = vmatprep.mubr.msk.f32.mxu0 %vm2348_vm0, %v2347_v0  ;;  %v115_v1 = vld [vmem:[%s2824_s1] sm:$0x3]  ;;  %v2467_v4 = vld [vmem:[#allocation3 + $0x10] sm:$0xff]   ;;  %v2474_v6 = vld [vmem:[#allocation3 + $0x8] sm:$0xff]   ;;  %vm253_vm3 = vcmask 523264   ;;  %vm436_vm4 = vcmask 516096  }
  0x40   :  { %1805 = vmatprep.subr.bf16.mxu1 %v2347_v0  ;;  %1813 = vmatprep.mubr.msk.bf16.mxu1 %vm2348_vm0, %v2347_v0  ;;  %v114_v2 = vld [vmem:[%s2823_s0] sm:$0xff]  ;;  %v2481_v7 = vld [vmem:[#allocation3] sm:$0xff]   ;;  %v2494_v10 = vld [vmem:[#allocation8 + $0x10] sm:$0xff]   ;;  %vm1583_vm5 = vcmask 523271   ;;  %s2349_s24 = smov [#allocation13]  }
  0x41   :  { %1801 = vmatpush3.msk.msra.mxu0 %vm127_vm1, %v115_v1  ;;  %v2463_v3 = vld [vmem:[#allocation3 + $0x18] sm:$0xff]   ;;  %v2497_v11 = vld [vmem:[#allocation8 + $0x8] sm:$0xff]   ;;  %v2503_v12 = vld [vmem:[#allocation8] sm:$0xff]   ;;  %s1602_s4 = sshll.u32 %s2349_s24, 4  ;;  %s1603_s4 = int_to_ptr.vmem [resolvable:$true] %s1602_s4 }
  0x42   :  { %1803 = vmatmul.mubr.msk.f32.vlgmr.msra.gmra.mxu0 %vm123_vm2, %v114_v2  ;;  %1817 = vmatprep.subr.bf16.mxu0 %v2347_v0  ;;  %v2472_v5 = vld [vmem:[#allocation8 + $0x18] sm:$0xff]   ;;  %v2522_v16 = vld [vmem:[#allocation6 + $0x10] sm:$0xff]   ;;  %v2526_v17 = vld [vmem:[#allocation6 + $0x8] sm:$0xff]   ;;  %s2288_s25 = scalar_lea.vmem %s1603_s4, 32  ;;  %p2293_p12 = scmp.lt.s32.totalorder %s1603_s4, %s1603_s4 }
  0x43   :  { %1818 = vmatpush3.bf16.msra.mxu0 %v2463_v3  ;;  %1825 = vmatprep.mubr.msk.bf16.mxu0 %vm2348_vm0, %v2347_v0  ;;  %v226_v8 = vld [vmem:[%s2830_s7] sm:$0x1]  ;;  %v227_v13 = vld [vmem:[%s2830_s7 + $0x1] sm:$0x1]  ;;  %v2530_v18 = vld [vmem:[#allocation6] sm:$0xff]   ;;  %p2289_p11 = scmp.ne.s32.totalorder %s1603_s4, %s2288_s25  ;;  %p2294_p13 = scmp.lt.s32.totalorder %s2288_s25, %s2288_s25 }
  0x44   :  { %1819 = vmatprep.subr.bf16.mxu0 %v2347_v0  ;;  %1806 = vmatpush3.bf16.msra.mxu1 %v2472_v5  ;;  %v297_v9 = vpack.c.bf16 %v226_v8, %v226_v8  ;;  %v228_v14 = vpack.c.bf16 %v227_v13, %v227_v13  ;;  %v2518_v15 = vld [vmem:[#allocation6 + $0x18] sm:$0xff]  }
  0x45   :  { %1807 = vmatprep.subr.bf16.mxu1 %v2347_v0  ;;  %v1617_v21 = vld [vmem:[%s2826_s3] ss:$0 sm:$0xff]  ;;  %p2295_p0 = por %p2294_p13, %p2293_p12 }
  0x46   :  { %v2565_v34 = vld [vmem:[%s2829_s6] sm:$0x1] }
  0x47   :  { %1820 = vmatpush3.bf16.msra.mxu0 %v2467_v4  ;;  %p2296_p1 = pnand %p2295_p0, %p2289_p11 }
  0x48   :  { %1821 = vmatprep.subr.bf16.mxu0 %v2347_v0  ;;  %1808 = vmatpush3.bf16.msra.mxu1 %v2494_v10 }
  0x49   :  { %1809 = vmatprep.subr.bf16.mxu1 %v2347_v0 }
  0x4b   :  { %1822 = vmatpush3.bf16.msra.mxu0 %v2474_v6 }
  0x4c   :  { %1823 = vmatprep.subr.bf16.mxu0 %v2347_v0  ;;  %1810 = vmatpush3.bf16.msra.mxu1 %v2497_v11 }
  0x4d   :  { %1811 = vmatprep.subr.bf16.mxu1 %v2347_v0 }
  0x4f   :  { %1824 = vmatpush3.bf16.msra.mxu0 %v2481_v7 }
  0x50   :  { %1841 = vmatprep.subr.bf16.mxu0 %v2347_v0  ;;  %1812 = vmatpush3.bf16.msra.mxu1 %v2503_v12 }
  0x51   :  { %1829 = vmatprep.subr.bf16.mxu1 %v2347_v0 }
  0x52   :  { %1826 = vmatmul.mubr.msk.bf16.vlgmr.msra.gmra.mxu0 %vm253_vm3, %v297_v9 }
  0x53   :  { %1842 = vmatpush3.bf16.msra.mxu0 %v2472_v5  ;;  %1849 = vmatprep.mubr.msk.bf16.mxu0 %vm2348_vm0, %v2347_v0 }
  0x54   :  { %1843 = vmatprep.subr.bf16.mxu0 %v2347_v0  ;;  %1814 = vmatmul.mubr.msk.bf16.vlgmr.msra.gmra.mxu1 %vm253_vm3, %v228_v14 }
  0x55   :  { %1837 = vmatprep.mubr.msk.bf16.mxu1 %vm2348_vm0, %v2347_v0  ;;  %1830 = vmatpush3.bf16.msra.mxu1 %v2518_v15 }
  0x56   :  { %1831 = vmatprep.subr.bf16.mxu1 %v2347_v0 }
  0x57   :  { %1844 = vmatpush3.bf16.msra.mxu0 %v2494_v10 }
  0x58   :  { %1845 = vmatprep.subr.bf16.mxu0 %v2347_v0 }
  0x59   :  { %1832 = vmatpush3.bf16.msra.mxu1 %v2522_v16 }
  0x5a   :  { %1833 = vmatprep.subr.bf16.mxu1 %v2347_v0 }
  0x5b   :  { %1846 = vmatpush3.bf16.msra.mxu0 %v2497_v11 }
  0x5c   :  { %1847 = vmatprep.subr.bf16.mxu0 %v2347_v0 }
  0x5d   :  { %1834 = vmatpush3.bf16.msra.mxu1 %v2526_v17 }
  0x5e   :  { %1835 = vmatprep.subr.bf16.mxu1 %v2347_v0 }
  0x5f   :  { %1848 = vmatpush3.bf16.msra.mxu0 %v2503_v12 }
  0x60   :  { %1865 = vmatprep.subr.bf16.mxu0 %v2347_v0 }
  0x61   :  { %1836 = vmatpush3.bf16.msra.mxu1 %v2530_v18 }
  0x62   :  { %1853 = vmatprep.subr.bf16.mxu1 %v2347_v0 }
 0x102   :  { %v197_v19 = vpop.f32.mrf.mxu0 }
 0x103   :  { %v2537_v22 = vadd.f32 %v1617_v21, %v197_v19 }
 0x104   :  { %v1804_v20 = vpop.f32.mrf.mxu0 }
 0x112   :  { %v359_v23 = vpop.f32.mrf.mxu0 }
 0x113   :  { %v365_v24 = vadd.f32 %v359_v23, %v2537_v22 }
 0x114   :  { %v1827_v25 = vpop.f32.mrf.mxu0  ;;  %v291_v30 = vpop.f32.mrf.mxu1 }
 0x115   :  { %2156 = vtanh.f32 %v365_v24  ;;  %v292_v35 = vadd.f32 %v291_v30, %v2565_v34 }
 0x116   :  { %v362_v26 = vpop.f32.mrf.mxu0  ;;  %v1815_v31 = vpop.f32.mrf.mxu1 }
 0x118   :  { %v1828_v27 = vpop.f32.mrf.mxu0  ;;  %v294_v32 = vpop.f32.mrf.mxu1 }
 0x11a   :  { %v1816_v33 = vpop.f32.mrf.mxu1 }
 0x122   :  { %v2157_v28 = vpop.eup %2156 }
 0x123   :  { %v367_v29 = vpack.c.bf16 %v2157_v28, %v2157_v28 }
 0x125   :  { %1838 = vmatmul.mubr.msk.bf16.vlgmr.msra.gmra.mxu1 %vm253_vm3, %v367_v29 }
 0x126   :  { %1854 = vmatpush3.bf16.msra.mxu1 %v2463_v3  ;;  %1861 = vmatprep.mubr.msk.bf16.mxu1 %vm2348_vm0, %v2347_v0 }
 0x127   :  { %1855 = vmatprep.subr.bf16.mxu1 %v2347_v0 }
 0x12a   :  { %1856 = vmatpush3.bf16.msra.mxu1 %v2467_v4 }
 0x12b   :  { %1857 = vmatprep.subr.bf16.mxu1 %v2347_v0 }
 0x12e   :  { %1858 = vmatpush3.bf16.msra.mxu1 %v2474_v6 }
 0x12f   :  { %1859 = vmatprep.subr.bf16.mxu1 %v2347_v0 }
 0x132   :  { %1860 = vmatpush3.bf16.msra.mxu1 %v2481_v7 }
 0x133   :  { %1877 = vmatprep.subr.bf16.mxu1 %v2347_v0 }
 0x135   :  { %1862 = vmatmul.mubr.msk.bf16.vlgmr.msra.gmra.mxu1 %vm253_vm3, %v367_v29 }
 0x136   :  { %1878 = vmatpush3.bf16.msra.mxu1 %v2472_v5  ;;  %1885 = vmatprep.mubr.msk.bf16.mxu1 %vm2348_vm0, %v2347_v0 }
 0x137   :  { %1879 = vmatprep.subr.bf16.mxu1 %v2347_v0 }
 0x13a   :  { %1880 = vmatpush3.bf16.msra.mxu1 %v2494_v10 }
 0x13b   :  { %1881 = vmatprep.subr.bf16.mxu1 %v2347_v0 }
 0x13e   :  { %1882 = vmatpush3.bf16.msra.mxu1 %v2497_v11 }
 0x13f   :  { %1883 = vmatprep.subr.bf16.mxu1 %v2347_v0 }
 0x142   :  { %1884 = vmatpush3.bf16.msra.mxu1 %v2503_v12 }
 0x143   :  { %1901 = vmatprep.subr.bf16.mxu1 %v2347_v0 }
 0x1e5   :  { %v429_v36 = vpop.f32.mrf.mxu1 }
 0x1e6   :  { %v430_v37 = vadd.f32 %v429_v36, %v292_v35 }
 0x1e7   :  { %v1839_v38 = vpop.f32.mrf.mxu1 }
 0x1e8   :  { %2158 = vtanh.f32 %v430_v37 }
 0x1e9   :  { %v432_v39 = vpop.f32.mrf.mxu1 }
 0x1eb   :  { %v1840_v40 = vpop.f32.mrf.mxu1 }
 0x1f5   :  { %v2159_v41 = vpop.eup %2158  ;;  %v516_v42 = vpop.f32.mrf.mxu1 }
 0x1f6   :  { %437 = vst.msk [vmem:[#allocation2] sm:$0x1] %vm436_vm4, %v2159_v41  ;;  %v523_v43 = vrot.slane %v516_v42, 7  ;;  %v438_v44 = vpack.c.bf16 %v2159_v41, %v2159_v41 }
 0x1f7   :  { %v1863_v45 = vpop.f32.mrf.mxu1 }
 0x1f8   :  { %v525_v46 = vadd.f32 %v523_v43, %v2537_v22  ;;  %1850 = vmatmul.mubr.msk.bf16.vlgmr.msra.gmra.mxu0 %vm253_vm3, %v438_v44 }
 0x1f9   :  { %v519_v47 = vpop.f32.mrf.mxu1  ;;  %1866 = vmatpush3.bf16.msra.mxu0 %v2518_v15  ;;  %1873 = vmatprep.mubr.msk.bf16.mxu0 %vm2348_vm0, %v2347_v0 }
 0x1fa   :  { %2160 = vtanh.f32 %v525_v46  ;;  %1867 = vmatprep.subr.bf16.mxu0 %v2347_v0 }
 0x1fb   :  { %v1864_v48 = vpop.f32.mrf.mxu1 }
 0x1fd   :  { %1868 = vmatpush3.bf16.msra.mxu0 %v2522_v16 }
 0x1fe   :  { %1869 = vmatprep.subr.bf16.mxu0 %v2347_v0 }
 0x201   :  { %1870 = vmatpush3.bf16.msra.mxu0 %v2526_v17 }
 0x202   :  { %1871 = vmatprep.subr.bf16.mxu0 %v2347_v0 }
 0x205   :  { %1872 = vmatpush3.bf16.msra.mxu0 %v2530_v18 }
 0x206   :  { %1889 = vmatprep.subr.bf16.mxu0 %v2347_v0 }
 0x207   :  { %v2161_v49 = vpop.eup %2160 }
 0x208   :  { %v527_v50 = vpack.c.bf16 %v2161_v49, %v2161_v49 }
 0x20a   :  { %v529_v51 = vshrl.u32 %v527_v50, 16 }
 0x20c   :  { %1874 = vmatmul.mubr.msk.bf16.vlgmr.msra.gmra.mxu0 %vm253_vm3, %v529_v51 }
 0x20d   :  { %1890 = vmatpush3.bf16.msra.mxu0 %v2463_v3  ;;  %1897 = vmatprep.mubr.msk.bf16.mxu0 %vm2348_vm0, %v2347_v0 }
 0x20e   :  { %1891 = vmatprep.subr.bf16.mxu0 %v2347_v0 }
 0x211   :  { %1892 = vmatpush3.bf16.msra.mxu0 %v2467_v4 }
 0x212   :  { %1893 = vmatprep.subr.bf16.mxu0 %v2347_v0 }
 0x215   :  { %1894 = vmatpush3.bf16.msra.mxu0 %v2474_v6 }
 0x216   :  { %1895 = vmatprep.subr.bf16.mxu0 %v2347_v0 }
 0x219   :  { %1896 = vmatpush3.bf16.msra.mxu0 %v2481_v7 }
 0x21a   :  { %1913 = vmatprep.subr.bf16.mxu0 %v2347_v0 }
 0x21c   :  { %1898 = vmatmul.mubr.msk.bf16.vlgmr.msra.gmra.mxu0 %vm253_vm3, %v529_v51 }
 0x21d   :  { %1914 = vmatpush3.bf16.msra.mxu0 %v2472_v5  ;;  %1921 = vmatprep.mubr.msk.bf16.mxu0 %vm2348_vm0, %v2347_v0 }
 0x21e   :  { %1915 = vmatprep.subr.bf16.mxu0 %v2347_v0 }
 0x221   :  { %1916 = vmatpush3.bf16.msra.mxu0 %v2494_v10 }
 0x222   :  { %1917 = vmatprep.subr.bf16.mxu0 %v2347_v0 }
 0x225   :  { %1918 = vmatpush3.bf16.msra.mxu0 %v2497_v11 }
 0x226   :  { %1919 = vmatprep.subr.bf16.mxu0 %v2347_v0 }
 0x229   :  { %1920 = vmatpush3.bf16.msra.mxu0 %v2503_v12 }
 0x22a   :  { %1937 = vmatprep.subr.bf16.mxu0 %v2347_v0 }
 0x2b8   :  { %v476_v52 = vpop.f32.mrf.mxu0 }
 0x2b9   :  { %v477_v56 = vadd.f32 %v476_v52, %v2565_v34 }
 0x2ba   :  { %v1851_v53 = vpop.f32.mrf.mxu0 }
 0x2bc   :  { %v479_v54 = vpop.f32.mrf.mxu0 }
 0x2be   :  { %v1852_v55 = vpop.f32.mrf.mxu0 }
 0x2cc   :  { %v568_v57 = vpop.f32.mrf.mxu0 }
 0x2cd   :  { %v569_v58 = vadd.f32 %v568_v57, %v477_v56 }
 0x2ce   :  { %v1875_v59 = vpop.f32.mrf.mxu0 }
 0x2cf   :  { %2162 = vtanh.f32 %v569_v58 }
 0x2d0   :  { %v571_v60 = vpop.f32.mrf.mxu0 }
 0x2d2   :  { %v1876_v61 = vpop.f32.mrf.mxu0 }
 0x2dc   :  { %v2163_v62 = vpop.eup %2162  ;;  %v654_v63 = vpop.f32.mrf.mxu0 }
 0x2dd   :  { %575 = vst.msk [vmem:[#allocation2 + $0x1] sm:$0x1] %vm436_vm4, %v2163_v62  ;;  %v661_v1 = vrot.slane %v654_v63, 6  ;;  %v576_v2 = vpack.c.bf16 %v2163_v62, %v2163_v62 }
 0x2de   :  { %v1899_v8 = vpop.f32.mrf.mxu0 }
 0x2df   :  { %v663_v9 = vadd.f32 %v661_v1, %v2537_v22  ;;  %1886 = vmatmul.mubr.msk.bf16.vlgmr.msra.gmra.mxu1 %vm253_vm3, %v576_v2 }
 0x2e0   :  { %v657_v13 = vpop.f32.mrf.mxu0  ;;  %1902 = vmatpush3.bf16.msra.mxu1 %v2518_v15  ;;  %1909 = vmatprep.mubr.msk.bf16.mxu1 %vm2348_vm0, %v2347_v0 }
 0x2e1   :  { %2164 = vtanh.f32 %v663_v9  ;;  %1903 = vmatprep.subr.bf16.mxu1 %v2347_v0 }
 0x2e2   :  { %v1900_v14 = vpop.f32.mrf.mxu0 }
 0x2e4   :  { %1904 = vmatpush3.bf16.msra.mxu1 %v2522_v16 }
 0x2e5   :  { %1905 = vmatprep.subr.bf16.mxu1 %v2347_v0 }
 0x2e8   :  { %1906 = vmatpush3.bf16.msra.mxu1 %v2526_v17 }
 0x2e9   :  { %1907 = vmatprep.subr.bf16.mxu1 %v2347_v0 }
 0x2ec   :  { %1908 = vmatpush3.bf16.msra.mxu1 %v2530_v18 }
 0x2ed   :  { %1925 = vmatprep.subr.bf16.mxu1 %v2347_v0 }
 0x2ee   :  { %v2165_v19 = vpop.eup %2164 }
 0x2ef   :  { %v665_v20 = vpack.c.bf16 %v2165_v19, %v2165_v19 }
 0x2f1   :  { %v667_v21 = vrot.slane %v665_v20, 1 }
 0x2f3   :  { %1910 = vmatmul.mubr.msk.bf16.vlgmr.msra.gmra.mxu1 %vm253_vm3, %v667_v21 }
 0x2f4   :  { %1926 = vmatpush3.bf16.msra.mxu1 %v2463_v3  ;;  %1933 = vmatprep.mubr.msk.bf16.mxu1 %vm2348_vm0, %v2347_v0 }
 0x2f5   :  { %1927 = vmatprep.subr.bf16.mxu1 %v2347_v0 }
 0x2f8   :  { %1928 = vmatpush3.bf16.msra.mxu1 %v2467_v4 }
 0x2f9   :  { %1929 = vmatprep.subr.bf16.mxu1 %v2347_v0 }
 0x2fc   :  { %1930 = vmatpush3.bf16.msra.mxu1 %v2474_v6 }
 0x2fd   :  { %1931 = vmatprep.subr.bf16.mxu1 %v2347_v0 }
 0x300   :  { %1932 = vmatpush3.bf16.msra.mxu1 %v2481_v7 }
 0x301   :  { %1949 = vmatprep.subr.bf16.mxu1 %v2347_v0 }
 0x303   :  { %1934 = vmatmul.mubr.msk.bf16.vlgmr.msra.gmra.mxu1 %vm253_vm3, %v667_v21 }
 0x304   :  { %1950 = vmatpush3.bf16.msra.mxu1 %v2472_v5  ;;  %1957 = vmatprep.mubr.msk.bf16.mxu1 %vm2348_vm0, %v2347_v0 }
 0x305   :  { %1951 = vmatprep.subr.bf16.mxu1 %v2347_v0 }
 0x308   :  { %1952 = vmatpush3.bf16.msra.mxu1 %v2494_v10 }
 0x309   :  { %1953 = vmatprep.subr.bf16.mxu1 %v2347_v0 }
 0x30c   :  { %1954 = vmatpush3.bf16.msra.mxu1 %v2497_v11 }
 0x30d   :  { %1955 = vmatprep.subr.bf16.mxu1 %v2347_v0 }
 0x310   :  { %1956 = vmatpush3.bf16.msra.mxu1 %v2503_v12 }
 0x311   :  { %1973 = vmatprep.subr.bf16.mxu1 %v2347_v0 }
 0x39f   :  { %v614_v23 = vpop.f32.mrf.mxu1 }
 0x3a0   :  { %v615_v27 = vadd.f32 %v614_v23, %v2565_v34 }
 0x3a1   :  { %v1887_v24 = vpop.f32.mrf.mxu1 }
 0x3a3   :  { %v617_v25 = vpop.f32.mrf.mxu1 }
 0x3a5   :  { %v1888_v26 = vpop.f32.mrf.mxu1 }
 0x3b3   :  { %v705_v28 = vpop.f32.mrf.mxu1 }
 0x3b4   :  { %v706_v29 = vadd.f32 %v705_v28, %v615_v27 }
 0x3b5   :  { %v1911_v30 = vpop.f32.mrf.mxu1 }
 0x3b6   :  { %2166 = vtanh.f32 %v706_v29 }
 0x3b7   :  { %v708_v31 = vpop.f32.mrf.mxu1 }
 0x3b9   :  { %v1912_v32 = vpop.f32.mrf.mxu1 }
 0x3c3   :  { %v2167_v33 = vpop.eup %2166  ;;  %v791_v35 = vpop.f32.mrf.mxu1 }
 0x3c4   :  { %712 = vst.msk [vmem:[#allocation2 + $0x2] sm:$0x1] %vm436_vm4, %v2167_v33  ;;  %v798_v36 = vrot.slane %v791_v35, 5  ;;  %v713_v37 = vpack.c.bf16 %v2167_v33, %v2167_v33 }
 0x3c5   :  { %v1935_v38 = vpop.f32.mrf.mxu1 }
 0x3c6   :  { %v800_v39 = vadd.f32 %v798_v36, %v2537_v22  ;;  %1922 = vmatmul.mubr.msk.bf16.vlgmr.msra.gmra.mxu0 %vm253_vm3, %v713_v37 }
 0x3c7   :  { %v794_v40 = vpop.f32.mrf.mxu1  ;;  %1938 = vmatpush3.bf16.msra.mxu0 %v2518_v15  ;;  %1945 = vmatprep.mubr.msk.bf16.mxu0 %vm2348_vm0, %v2347_v0 }
 0x3c8   :  { %2168 = vtanh.f32 %v800_v39  ;;  %1939 = vmatprep.subr.bf16.mxu0 %v2347_v0 }
 0x3c9   :  { %v1936_v41 = vpop.f32.mrf.mxu1 }
 0x3cb   :  { %1940 = vmatpush3.bf16.msra.mxu0 %v2522_v16 }
 0x3cc   :  { %1941 = vmatprep.subr.bf16.mxu0 %v2347_v0 }
 0x3cf   :  { %1942 = vmatpush3.bf16.msra.mxu0 %v2526_v17 }
 0x3d0   :  { %1943 = vmatprep.subr.bf16.mxu0 %v2347_v0 }
 0x3d3   :  { %1944 = vmatpush3.bf16.msra.mxu0 %v2530_v18 }
 0x3d4   :  { %1961 = vmatprep.subr.bf16.mxu0 %v2347_v0 }
 0x3d5   :  { %v2169_v42 = vpop.eup %2168 }
 0x3d6   :  { %v802_v43 = vpack.c.bf16 %v2169_v42, %v2169_v42 }
 0x3d8   :  { %v804_v44 = vshrl.u32 %v802_v43, 16 }
 0x3da   :  { %v806_v45 = vrot.slane %v804_v44, 1 }
 0x3dc   :  { %1946 = vmatmul.mubr.msk.bf16.vlgmr.msra.gmra.mxu0 %vm253_vm3, %v806_v45 }
 0x3dd   :  { %1962 = vmatpush3.bf16.msra.mxu0 %v2463_v3  ;;  %1969 = vmatprep.mubr.msk.bf16.mxu0 %vm2348_vm0, %v2347_v0 }
 0x3de   :  { %1963 = vmatprep.subr.bf16.mxu0 %v2347_v0 }
 0x3e1   :  { %1964 = vmatpush3.bf16.msra.mxu0 %v2467_v4 }
 0x3e2   :  { %1965 = vmatprep.subr.bf16.mxu0 %v2347_v0 }
 0x3e5   :  { %1966 = vmatpush3.bf16.msra.mxu0 %v2474_v6 }
 0x3e6   :  { %1967 = vmatprep.subr.bf16.mxu0 %v2347_v0 }
 0x3e9   :  { %1968 = vmatpush3.bf16.msra.mxu0 %v2481_v7 }
 0x3ea   :  { %1985 = vmatprep.subr.bf16.mxu0 %v2347_v0 }
 0x3ec   :  { %1970 = vmatmul.mubr.msk.bf16.vlgmr.msra.gmra.mxu0 %vm253_vm3, %v806_v45 }
 0x3ed   :  { %1986 = vmatpush3.bf16.msra.mxu0 %v2472_v5  ;;  %1993 = vmatprep.mubr.msk.bf16.mxu0 %vm2348_vm0, %v2347_v0 }
 0x3ee   :  { %1987 = vmatprep.subr.bf16.mxu0 %v2347_v0 }
 0x3f1   :  { %1988 = vmatpush3.bf16.msra.mxu0 %v2494_v10 }
 0x3f2   :  { %1989 = vmatprep.subr.bf16.mxu0 %v2347_v0 }
 0x3f5   :  { %1990 = vmatpush3.bf16.msra.mxu0 %v2497_v11 }
 0x3f6   :  { %1991 = vmatprep.subr.bf16.mxu0 %v2347_v0 }
 0x3f9   :  { %1992 = vmatpush3.bf16.msra.mxu0 %v2503_v12 }
 0x3fa   :  { %2009 = vmatprep.subr.bf16.mxu0 %v2347_v0 }
 0x486   :  { %v751_v46 = vpop.f32.mrf.mxu0 }
 0x487   :  { %v752_v50 = vadd.f32 %v751_v46, %v2565_v34 }
 0x488   :  { %v1923_v47 = vpop.f32.mrf.mxu0 }
 0x48a   :  { %v754_v48 = vpop.f32.mrf.mxu0 }
 0x48c   :  { %v1924_v49 = vpop.f32.mrf.mxu0 }
 0x49c   :  { %v844_v51 = vpop.f32.mrf.mxu0 }
 0x49d   :  { %v845_v52 = vadd.f32 %v844_v51, %v752_v50 }
 0x49e   :  { %v1947_v53 = vpop.f32.mrf.mxu0 }
 0x49f   :  { %2170 = vtanh.f32 %v845_v52 }
 0x4a0   :  { %v847_v54 = vpop.f32.mrf.mxu0 }
 0x4a2   :  { %v1948_v55 = vpop.f32.mrf.mxu0 }
 0x4ac   :  { %v2171_v56 = vpop.eup %2170  ;;  %v930_v57 = vpop.f32.mrf.mxu0 }
 0x4ad   :  { %851 = vst.msk [vmem:[#allocation2 + $0x3] sm:$0x1] %vm436_vm4, %v2171_v56  ;;  %v937_v58 = vrot.slane %v930_v57, 4  ;;  %v852_v59 = vpack.c.bf16 %v2171_v56, %v2171_v56 }
 0x4ae   :  { %v1971_v60 = vpop.f32.mrf.mxu0 }
 0x4af   :  { %v939_v61 = vadd.f32 %v937_v58, %v2537_v22  ;;  %1958 = vmatmul.mubr.msk.bf16.vlgmr.msra.gmra.mxu1 %vm253_vm3, %v852_v59 }
 0x4b0   :  { %v933_v62 = vpop.f32.mrf.mxu0  ;;  %1974 = vmatpush3.bf16.msra.mxu1 %v2518_v15  ;;  %1981 = vmatprep.mubr.msk.bf16.mxu1 %vm2348_vm0, %v2347_v0 }
 0x4b1   :  { %2172 = vtanh.f32 %v939_v61  ;;  %1975 = vmatprep.subr.bf16.mxu1 %v2347_v0 }
 0x4b2   :  { %v1972_v63 = vpop.f32.mrf.mxu0 }
 0x4b4   :  { %1976 = vmatpush3.bf16.msra.mxu1 %v2522_v16 }
 0x4b5   :  { %1977 = vmatprep.subr.bf16.mxu1 %v2347_v0 }
 0x4b8   :  { %1978 = vmatpush3.bf16.msra.mxu1 %v2526_v17 }
 0x4b9   :  { %1979 = vmatprep.subr.bf16.mxu1 %v2347_v0 }
 0x4bc   :  { %1980 = vmatpush3.bf16.msra.mxu1 %v2530_v18 }
 0x4bd   :  { %1997 = vmatprep.subr.bf16.mxu1 %v2347_v0 }
 0x4be   :  { %v2173_v1 = vpop.eup %2172 }
 0x4bf   :  { %v941_v2 = vpack.c.bf16 %v2173_v1, %v2173_v1 }
 0x4c1   :  { %v943_v8 = vrot.slane %v941_v2, 2 }
 0x4c3   :  { %1982 = vmatmul.mubr.msk.bf16.vlgmr.msra.gmra.mxu1 %vm253_vm3, %v943_v8 }
 0x4c4   :  { %1998 = vmatpush3.bf16.msra.mxu1 %v2463_v3  ;;  %2005 = vmatprep.mubr.msk.bf16.mxu1 %vm2348_vm0, %v2347_v0 }
 0x4c5   :  { %1999 = vmatprep.subr.bf16.mxu1 %v2347_v0 }
 0x4c8   :  { %2000 = vmatpush3.bf16.msra.mxu1 %v2467_v4 }
 0x4c9   :  { %2001 = vmatprep.subr.bf16.mxu1 %v2347_v0 }
 0x4cc   :  { %2002 = vmatpush3.bf16.msra.mxu1 %v2474_v6 }
 0x4cd   :  { %2003 = vmatprep.subr.bf16.mxu1 %v2347_v0 }
 0x4d0   :  { %2004 = vmatpush3.bf16.msra.mxu1 %v2481_v7 }
 0x4d1   :  { %2021 = vmatprep.subr.bf16.mxu1 %v2347_v0 }
 0x4d3   :  { %2006 = vmatmul.mubr.msk.bf16.vlgmr.msra.gmra.mxu1 %vm253_vm3, %v943_v8 }
 0x4d4   :  { %2022 = vmatpush3.bf16.msra.mxu1 %v2472_v5  ;;  %2029 = vmatprep.mubr.msk.bf16.mxu1 %vm2348_vm0, %v2347_v0 }
 0x4d5   :  { %2023 = vmatprep.subr.bf16.mxu1 %v2347_v0 }
 0x4d8   :  { %2024 = vmatpush3.bf16.msra.mxu1 %v2494_v10 }
 0x4d9   :  { %2025 = vmatprep.subr.bf16.mxu1 %v2347_v0 }
 0x4dc   :  { %2026 = vmatpush3.bf16.msra.mxu1 %v2497_v11 }
 0x4dd   :  { %2027 = vmatprep.subr.bf16.mxu1 %v2347_v0 }
 0x4e0   :  { %2028 = vmatpush3.bf16.msra.mxu1 %v2503_v12 }
 0x4e1   :  { %2045 = vmatprep.subr.bf16.mxu1 %v2347_v0 }
 0x56f   :  { %v890_v9 = vpop.f32.mrf.mxu1 }
 0x570   :  { %v891_v20 = vadd.f32 %v890_v9, %v2565_v34 }
 0x571   :  { %v1959_v13 = vpop.f32.mrf.mxu1 }
 0x573   :  { %v893_v14 = vpop.f32.mrf.mxu1 }
 0x575   :  { %v1960_v19 = vpop.f32.mrf.mxu1 }
 0x583   :  { %v981_v21 = vpop.f32.mrf.mxu1 }
 0x584   :  { %v982_v23 = vadd.f32 %v981_v21, %v891_v20 }
 0x585   :  { %v1983_v24 = vpop.f32.mrf.mxu1 }
 0x586   :  { %2174 = vtanh.f32 %v982_v23  ;;  %v1409_v23 = vld [vmem:[#allocation9 + $0x20] sm:$0xff]  ;;  %v1408_v24 = vld [vmem:[#allocation9 + $0x18] sm:$0xff] }
 0x587   :  { %v984_v25 = vpop.f32.mrf.mxu1 }
 0x588   :  { %v1407_v25 = vld [vmem:[#allocation9 + $0x10] sm:$0xff] }
 0x589   :  { %v1984_v26 = vpop.f32.mrf.mxu1 }
 0x58a   :  { %v1406_v26 = vld [vmem:[#allocation9 + $0x8] sm:$0xff] }
 0x593   :  { %v2175_v27 = vpop.eup %2174  ;;  %v1067_v28 = vpop.f32.mrf.mxu1 }
 0x594   :  { %988 = vst.msk [vmem:[#allocation2 + $0x4] sm:$0x1] %vm436_vm4, %v2175_v27  ;;  %v1074_v29 = vrot.slane %v1067_v28, 3  ;;  %v989_v30 = vpack.c.bf16 %v2175_v27, %v2175_v27  ;;  %v1405_v27 = vld [vmem:[#allocation9] sm:$0xff]  ;;  %v1501_v28 = vld [vmem:[#allocation11 + $0x38] sm:$0xff] }
 0x595   :  { %v2007_v31 = vpop.f32.mrf.mxu1 }
 0x596   :  { %v1076_v32 = vadd.f32 %v1074_v29, %v2537_v22  ;;  %1994 = vmatmul.mubr.msk.bf16.vlgmr.msra.gmra.mxu0 %vm253_vm3, %v989_v30  ;;  %v1500_v29 = vld [vmem:[#allocation11 + $0x30] sm:$0xff]  ;;  %v1499_v30 = vld [vmem:[#allocation11 + $0x28] sm:$0xff]  ;;  %v1498_v31 = vld [vmem:[#allocation11 + $0x20] sm:$0xff] }
 0x597   :  { %v1070_v33 = vpop.f32.mrf.mxu1  ;;  %2010 = vmatpush3.bf16.msra.mxu0 %v2518_v15  ;;  %2017 = vmatprep.mubr.msk.bf16.mxu0 %vm2348_vm0, %v2347_v0 }
 0x598   :  { %2176 = vtanh.f32 %v1076_v32  ;;  %2011 = vmatprep.subr.bf16.mxu0 %v2347_v0  ;;  %v1497_v32 = vld [vmem:[#allocation11 + $0x18] sm:$0xff] }
 0x599   :  { %v2008_v35 = vpop.f32.mrf.mxu1 }
 0x59b   :  { %2012 = vmatpush3.bf16.msra.mxu0 %v2522_v16 }
 0x59c   :  { %2013 = vmatprep.subr.bf16.mxu0 %v2347_v0 }
 0x59f   :  { %2014 = vmatpush3.bf16.msra.mxu0 %v2526_v17 }
 0x5a0   :  { %2015 = vmatprep.subr.bf16.mxu0 %v2347_v0 }
 0x5a3   :  { %2016 = vmatpush3.bf16.msra.mxu0 %v2530_v18 }
 0x5a4   :  { %2033 = vmatprep.subr.bf16.mxu0 %v2347_v0 }
 0x5a5   :  { %v2177_v36 = vpop.eup %2176 }
 0x5a6   :  { %v1078_v37 = vpack.c.bf16 %v2177_v36, %v2177_v36 }
 0x5a8   :  { %v1080_v38 = vshrl.u32 %v1078_v37, 16 }
 0x5aa   :  { %v1082_v39 = vrot.slane %v1080_v38, 2 }
 0x5ac   :  { %2018 = vmatmul.mubr.msk.bf16.vlgmr.msra.gmra.mxu0 %vm253_vm3, %v1082_v39 }
 0x5ad   :  { %2034 = vmatpush3.bf16.msra.mxu0 %v2463_v3  ;;  %2041 = vmatprep.mubr.msk.bf16.mxu0 %vm2348_vm0, %v2347_v0 }
 0x5ae   :  { %2035 = vmatprep.subr.bf16.mxu0 %v2347_v0 }
 0x5b1   :  { %2036 = vmatpush3.bf16.msra.mxu0 %v2467_v4 }
 0x5b2   :  { %2037 = vmatprep.subr.bf16.mxu0 %v2347_v0 }
 0x5b5   :  { %2038 = vmatpush3.bf16.msra.mxu0 %v2474_v6 }
 0x5b6   :  { %2039 = vmatprep.subr.bf16.mxu0 %v2347_v0 }
 0x5b9   :  { %2040 = vmatpush3.bf16.msra.mxu0 %v2481_v7 }
 0x5ba   :  { %2057 = vmatprep.subr.bf16.mxu0 %v2347_v0 }
 0x5bc   :  { %2042 = vmatmul.mubr.msk.bf16.vlgmr.msra.gmra.mxu0 %vm253_vm3, %v1082_v39 }
 0x5bd   :  { %2058 = vmatpush3.bf16.msra.mxu0 %v2472_v5  ;;  %2065 = vmatprep.mubr.msk.bf16.mxu0 %vm2348_vm0, %v2347_v0 }
 0x5be   :  { %2059 = vmatprep.subr.bf16.mxu0 %v2347_v0 }
 0x5c1   :  { %2060 = vmatpush3.bf16.msra.mxu0 %v2494_v10 }
 0x5c2   :  { %2061 = vmatprep.subr.bf16.mxu0 %v2347_v0 }
 0x5c5   :  { %2062 = vmatpush3.bf16.msra.mxu0 %v2497_v11 }
 0x5c6   :  { %2063 = vmatprep.subr.bf16.mxu0 %v2347_v0 }
 0x5c9   :  { %2064 = vmatpush3.bf16.msra.mxu0 %v2503_v12 }
 0x5ca   :  { %2081 = vmatprep.subr.bf16.mxu0 %v2347_v0 }
 0x656   :  { %v1027_v40 = vpop.f32.mrf.mxu0 }
 0x657   :  { %v1028_v43 = vadd.f32 %v1027_v40, %v2565_v34 }
 0x658   :  { %v1995_v41 = vpop.f32.mrf.mxu0 }
 0x65a   :  { %v1030_v5 = vpop.f32.mrf.mxu0 }
 0x65c   :  { %v1996_v42 = vpop.f32.mrf.mxu0 }
 0x66c   :  { %v1120_v44 = vpop.f32.mrf.mxu0 }
 0x66d   :  { %v1121_v45 = vadd.f32 %v1120_v44, %v1028_v43 }
 0x66e   :  { %v2019_v46 = vpop.f32.mrf.mxu0 }
 0x66f   :  { %2178 = vtanh.f32 %v1121_v45  ;;  %v1496_v45 = vld [vmem:[#allocation11 + $0x10] sm:$0xff]  ;;  %v1495_v46 = vld [vmem:[#allocation11 + $0x8] sm:$0xff] }
 0x670   :  { %v1123_v10 = vpop.f32.mrf.mxu0 }
 0x671   :  { %v1656_v10 = vld [vmem:[%s2832_s9] ss:$0 sm:$0xff] }
 0x672   :  { %v2020_v47 = vpop.f32.mrf.mxu0 }
 0x67c   :  { %v2179_v48 = vpop.eup %2178  ;;  %v1206_v11 = vpop.f32.mrf.mxu0 }
 0x67d   :  { %1127 = vst.msk [vmem:[#allocation2 + $0x5] sm:$0x1] %vm436_vm4, %v2179_v48  ;;  %v1213_v49 = vrot.slane %v1206_v11, 2  ;;  %v1128_v12 = vpack.c.bf16 %v2179_v48, %v2179_v48 }
 0x67e   :  { %v2043_v50 = vpop.f32.mrf.mxu0 }
 0x67f   :  { %v1215_v51 = vadd.f32 %v1213_v49, %v2537_v22  ;;  %2030 = vmatmul.mubr.msk.bf16.vlgmr.msra.gmra.mxu1 %vm253_vm3, %v1128_v12 }
 0x680   :  { %v1209_v52 = vpop.f32.mrf.mxu0  ;;  %2046 = vmatpush3.bf16.msra.mxu1 %v2518_v15  ;;  %2053 = vmatprep.mubr.msk.bf16.mxu1 %vm2348_vm0, %v2347_v0 }
 0x681   :  { %2180 = vtanh.f32 %v1215_v51  ;;  %2047 = vmatprep.subr.bf16.mxu1 %v2347_v0 }
 0x682   :  { %v2044_v53 = vpop.f32.mrf.mxu0 }
 0x684   :  { %2048 = vmatpush3.bf16.msra.mxu1 %v2522_v16 }
 0x685   :  { %2049 = vmatprep.subr.bf16.mxu1 %v2347_v0 }
 0x688   :  { %2050 = vmatpush3.bf16.msra.mxu1 %v2526_v17 }
 0x689   :  { %2051 = vmatprep.subr.bf16.mxu1 %v2347_v0 }
 0x68c   :  { %2052 = vmatpush3.bf16.msra.mxu1 %v2530_v18 }
 0x68d   :  { %2069 = vmatprep.subr.bf16.mxu1 %v2347_v0 }
 0x68e   :  { %v2181_v54 = vpop.eup %2180 }
 0x68f   :  { %v1217_v55 = vpack.c.bf16 %v2181_v54, %v2181_v54 }
 0x691   :  { %v1219_v56 = vrot.slane %v1217_v55, 3 }
 0x693   :  { %2054 = vmatmul.mubr.msk.bf16.vlgmr.msra.gmra.mxu1 %vm253_vm3, %v1219_v56 }
 0x694   :  { %2070 = vmatpush3.bf16.msra.mxu1 %v2463_v3  ;;  %2077 = vmatprep.mubr.msk.bf16.mxu1 %vm2348_vm0, %v2347_v0 }
 0x695   :  { %2071 = vmatprep.subr.bf16.mxu1 %v2347_v0 }
 0x698   :  { %2072 = vmatpush3.bf16.msra.mxu1 %v2467_v4 }
 0x699   :  { %2073 = vmatprep.subr.bf16.mxu1 %v2347_v0 }
 0x69c   :  { %2074 = vmatpush3.bf16.msra.mxu1 %v2474_v6 }
 0x69d   :  { %2075 = vmatprep.subr.bf16.mxu1 %v2347_v0 }
 0x6a0   :  { %2076 = vmatpush3.bf16.msra.mxu1 %v2481_v7 }
 0x6a1   :  { %2093 = vmatprep.subr.mxu1 %v2347_v0 }
 0x6a3   :  { %2078 = vmatmul.mubr.msk.bf16.vlgmr.msra.gmra.mxu1 %vm253_vm3, %v1219_v56 }
 0x6a4   :  { %2109 = vmatprep.mubr.msk.f32.mxu1 %vm2348_vm0, %v2347_v0 }
 0x73f   :  { %v1166_v3 = vpop.f32.mrf.mxu1 }
 0x740   :  { %v1167_v4 = vadd.f32 %v1166_v3, %v2565_v34 }
 0x741   :  { %v2031_v57 = vpop.f32.mrf.mxu1 }
 0x743   :  { %v1169_v58 = vpop.f32.mrf.mxu1 }
 0x745   :  { %v2032_v59 = vpop.f32.mrf.mxu1 }
 0x753   :  { %v1257_v60 = vpop.f32.mrf.mxu1 }
 0x754   :  { %v1258_v61 = vadd.f32 %v1257_v60, %v1167_v4 }
 0x755   :  { %v2055_v6 = vpop.f32.mrf.mxu1 }
 0x756   :  { %2182 = vtanh.f32 %v1258_v61 }
 0x757   :  { %v1260_v62 = vpop.f32.mrf.mxu1 }
 0x759   :  { %v2056_v63 = vpop.f32.mrf.mxu1 }
 0x763   :  { %v2183_v7 = vpop.eup %2182  ;;  %v1343_v1 = vpop.f32.mrf.mxu1 }
 0x764   :  { %1264 = vst.msk [vmem:[#allocation2 + $0x6] sm:$0x1] %vm436_vm4, %v2183_v7  ;;  %v1350_v2 = vrot.slane %v1343_v1, 1  ;;  %v1265_v8 = vpack.c.bf16 %v2183_v7, %v2183_v7 }
 0x765   :  { %v2079_v9 = vpop.f32.mrf.mxu1 }
 0x766   :  { %v1352_v13 = vadd.f32 %v1350_v2, %v2537_v22  ;;  %2066 = vmatmul.mubr.msk.bf16.vlgmr.msra.gmra.mxu0 %vm253_vm3, %v1265_v8 }
 0x767   :  { %v1346_v14 = vpop.f32.mrf.mxu1  ;;  %2082 = vmatpush3.bf16.msra.mxu0 %v2518_v15  ;;  %2089 = vmatprep.mubr.msk.bf16.mxu0 %vm2348_vm0, %v2347_v0 }
 0x768   :  { %2184 = vtanh.f32 %v1352_v13  ;;  %2083 = vmatprep.subr.bf16.mxu0 %v2347_v0 }
 0x769   :  { %v2080_v19 = vpop.f32.mrf.mxu1 }
 0x76b   :  { %2084 = vmatpush3.bf16.msra.mxu0 %v2522_v16  ;;  %v1412_v16 = vld [vmem:[#allocation9 + $0x38] sm:$0xff] }
 0x76c   :  { %2085 = vmatprep.subr.bf16.mxu0 %v2347_v0  ;;  %2094 = vmatpush3.msra.mxu1 %v1412_v16 }
 0x76d   :  { %2095 = vmatprep.subr.mxu1 %v2347_v0 }
 0x76f   :  { %2086 = vmatpush3.bf16.msra.mxu0 %v2526_v17  ;;  %v1411_v17 = vld [vmem:[#allocation9 + $0x30] sm:$0xff] }
 0x770   :  { %2087 = vmatprep.subr.bf16.mxu0 %v2347_v0  ;;  %2096 = vmatpush3.msra.mxu1 %v1411_v17 }
 0x771   :  { %2097 = vmatprep.subr.mxu1 %v2347_v0 }
 0x773   :  { %2088 = vmatpush3.bf16.msra.mxu0 %v2530_v18  ;;  %v1410_v18 = vld [vmem:[#allocation9 + $0x28] sm:$0xff] }
 0x774   :  { %2112 = vmatprep.subr.mxu0 %v2347_v0  ;;  %2098 = vmatpush3.msra.mxu1 %v1410_v18 }
 0x775   :  { %v2185_v15 = vpop.eup %2184  ;;  %2099 = vmatprep.subr.mxu1 %v2347_v0 }
 0x776   :  { %v1354_v22 = vpack.c.bf16 %v2185_v15, %v2185_v15  ;;  %1584 = vst.msk [vmem:[#allocation13 - $0x7] sm:$0x80] %vm1583_vm5, %v2185_v15  ;;  %2100 = vmatpush3.msra.mxu1 %v1409_v23 }
 0x777   :  { %2101 = vmatprep.subr.mxu1 %v2347_v0 }
 0x778   :  { %v1356_v20 = vshrl.u32 %v1354_v22, 16  ;;  %2102 = vmatpush3.msra.mxu1 %v1408_v24 }
 0x779   :  { %2103 = vmatprep.subr.mxu1 %v2347_v0 }
 0x77a   :  { %v1358_v21 = vrot.slane %v1356_v20, 3  ;;  %2104 = vmatpush3.msra.mxu1 %v1407_v25 }
 0x77b   :  { %2105 = vmatprep.subr.mxu1 %v2347_v0 }
 0x77c   :  { %2090 = vmatmul.mubr.msk.bf16.vlgmr.msra.gmra.mxu0 %vm253_vm3, %v1358_v21  ;;  %2106 = vmatpush3.msra.mxu1 %v1406_v26 }
 0x77d   :  { %2128 = vmatprep.mubr.msk.f32.mxu0 %vm2348_vm0, %v2347_v0  ;;  %2107 = vmatprep.subr.mxu1 %v2347_v0 }
 0x77e   :  { %2108 = vmatpush3.msra.mxu1 %v1405_v27  ;;  %2113 = vmatpush3.msra.mxu0 %v1501_v28 }
 0x77f   :  { %2114 = vmatprep.subr.mxu0 %v2347_v0 }
 0x780   :  { %2115 = vmatpush3.msra.mxu0 %v1500_v29 }
 0x781   :  { %2116 = vmatprep.subr.mxu0 %v2347_v0 }
 0x782   :  { %2117 = vmatpush3.msra.mxu0 %v1499_v30 }
 0x783   :  { %2118 = vmatprep.subr.mxu0 %v2347_v0 }
 0x784   :  { %2119 = vmatpush3.msra.mxu0 %v1498_v31 }
 0x785   :  { %2120 = vmatprep.subr.mxu0 %v2347_v0 }
 0x786   :  { %2121 = vmatpush3.msra.mxu0 %v1497_v32 }
 0x787   :  { %2122 = vmatprep.subr.mxu0 %v2347_v0 }
 0x788   :  { %2123 = vmatpush3.msra.mxu0 %v1496_v45 }
 0x789   :  { %2124 = vmatprep.subr.mxu0 %v2347_v0 }
 0x78a   :  { %2125 = vmatpush3.msra.mxu0 %v1495_v46 }
 0x78b   :  { %2126 = vmatprep.subr.mxu0 %v2347_v0 }
 0x826   :  { %v1303_v33 = vpop.f32.mrf.mxu0 }
 0x827   :  { %v1304_v38 = vadd.f32 %v1303_v33, %v2565_v34  ;;  %v1494_v34 = vld [vmem:[#allocation11] sm:$0xff] }
 0x828   :  { %v2067_v35 = vpop.f32.mrf.mxu0  ;;  %2127 = vmatpush3.msra.mxu0 %v1494_v34 }
 0x82a   :  { %v1306_v36 = vpop.f32.mrf.mxu0 }
 0x82c   :  { %v2068_v37 = vpop.f32.mrf.mxu0 }
 0x83c   :  { %v1396_v39 = vpop.f32.mrf.mxu0 }
 0x83d   :  { %v1397_v40 = vadd.f32 %v1396_v39, %v1304_v38 }
 0x83e   :  { %v2091_v41 = vpop.f32.mrf.mxu0 }
 0x83f   :  { %2186 = vtanh.f32 %v1397_v40 }
 0x840   :  { %v1399_v5 = vpop.f32.mrf.mxu0 }
 0x842   :  { %v2092_v42 = vpop.f32.mrf.mxu0 }
 0x84c   :  { %v2187_v43 = vpop.eup %2186 }
 0x84d   :  { %1403 = vst.msk [vmem:[#allocation2 + $0x7] sm:$0x1] %vm436_vm4, %v2187_v43  ;;  %1585 = vst.msk [vmem:[#allocation13 + $0x1] sm:$0x1] %vm436_vm4, %v2187_v43 }
 0x854   :  { %v1404_v44 = vld [vmem:[#allocation2] sm:$0xff] }
 0x855   :  { %2110 = vmatmul.mubr.msk.f32.vlgmr.msra.gmra.mxu1 %vm253_vm3, %v1404_v44 }
 0x915   :  { %v1489_v47 = vpop.f32.mrf.mxu1 }
 0x916   :  { %v1490_v48 = vadd.f32 %v1656_v10, %v1489_v47 }
 0x917   :  { %v2111_v11 = vpop.f32.mrf.mxu1 }
 0x918   :  { %v1493_v49 = vmax.f32 %v1490_v48, 0.0 }
 0x91a   :  { %2129 = vmatmul.mubr.msk.f32.vlgmr.msra.gmra.mxu0 %vm253_vm3, %v1493_v49 }
 0x91b   :  { %2299 = shalt.err (!%p2296_p1)
}
 0x91c   :  { %1605 = dma.vmem_to_hbm [thread:$0]  %s1603_s4, 32, %s2836_s13, [#allocation14]   ;;  %v1658_v0 = vld [vmem:[%s2834_s11] ss:$0 sm:$0xff] }
 0x91d   :  { %s2350_s28 = smov [#allocation12]  }
 0x91e   :  { %s1592_s29 = sshll.u32 %s2350_s28, 4  ;;  %s1593_s29 = int_to_ptr.vmem [resolvable:$true] %s1592_s29 }
 0x91f   :  { %s2308_s15 = scalar_lea.vmem %s1593_s29, 128  ;;  %p2313_p3 = scmp.lt.s32.totalorder %s1593_s29, %s1593_s29 }
 0x920   :  { %p2309_p2 = scmp.ne.s32.totalorder %s1593_s29, %s2308_s15  ;;  %p2314_p4 = scmp.lt.s32.totalorder %s2308_s15, %s2308_s15 }
 0x922   :  { %p2315_p5 = por %p2314_p4, %p2313_p3 }
 0x924   :  { %p2316_p6 = pnand %p2315_p5, %p2309_p2 }
 0x9da   :  { %v1578_v12 = vpop.f32.mrf.mxu0 }
 0x9db   :  { %v1579_v50 = vadd.f32 %v1658_v0, %v1578_v12 }
 0x9dc   :  { %v2130_v51 = vpop.f32.mrf.mxu0 }
 0x9dd   :  { %1582 = vst [vmem:[#allocation12] sm:$0xff] %v1579_v50 }
 0x9de   :  { %2319 = shalt.err (!%p2316_p6)
}
 0x9df   :  { %1595 = dma.vmem_to_hbm [thread:$0]  %s1593_s29, 128, %s2835_s12, [#allocation5]  }
 0x9e0   :  { %2334 = dma.done.wait [#allocation5], 128  }
 0x9e1   :  { %2335 = vsyncadd [#allocation5], 4294967168 }
 0x9e2   :  { %2336 = dma.done.wait [#allocation14], 32  }
 0x9e3   :  { %2337 = vsyncadd [#allocation14], 4294967264 }
 0x9e4   :  { %1612 = vsyncpa [#allocation4], 1 }
 0x9e5   :  { %1613 = vsyncpa [#allocation7], 1 }
 0x9e6   :  { %1614 = vsyncpa [#allocation10], 1 }
 0x9e7   :  { %1615 = vsyncpa [#allocation5], 1 }
 0x9e8   :  { %1616 = vsyncpa [#allocation14], 1 }

</bundles_post_ra>
